<compile_context>
chip_gen: v5e
topology: v5e:2x2
jax: 0.10.0
libtpu: 0.0.40
codegen_flags: <defaults>
</compile_context>

<pallas_src>
import jax
import jax.numpy as jnp
from jax.experimental import pallas as pl
from jax.experimental.pallas import tpu as pltpu

_LANE = 128
_SUBLANE = 8


def _cdiv(a, b):
    return -(-a // b)


def _round_up(x, m):
    return ((x + m - 1) // m) * m


def mlp_kernel(x_ref, w0_ref, b0_ref, w1_ref, b1_ref, w2_ref, b2_ref, o_ref):
    # Weights are already stored in the MXU compute dtype (bf16 on v6e/v7x,
    # f32 on v5e); the only per-step cast is the tiny (tile, input_dim) x tile.
    cdt = w0_ref.dtype
    x = x_ref[...].astype(cdt)

    # Layer 0: Linear(input -> hidden) + tanh  (f32 accumulation on the MXU).
    h = jnp.tanh(
        jnp.dot(x, w0_ref[...], preferred_element_type=jnp.float32) + b0_ref[...]
    )
    # Layer 1: Linear(hidden -> hidden) + tanh.
    h = jnp.tanh(
        jnp.dot(h.astype(cdt), w1_ref[...], preferred_element_type=jnp.float32)
        + b1_ref[...]
    )
    # Output layer: Linear(hidden -> output), no activation.
    y = (jnp.dot(h.astype(cdt), w2_ref[...], preferred_element_type=jnp.float32)
         + b2_ref[...])
    o_ref[...] = y.astype(o_ref.dtype)


def default_compute_dtype():
    """bf16 MXU inputs on v6e/v7x (f32 accumulation kept via
    preferred_element_type); f32 on v5e / anything unrecognized (v5e has no
    bf16 VPU/EUP path, so bf16 only adds conversion overhead there)."""
    try:
        kind = jax.devices()[0].device_kind.lower()
    except Exception:
        return jnp.float32
    if ("v6" in kind) or ("v7" in kind):
        return jnp.bfloat16
    return jnp.float32


def prepare_params(params, compute_dtype):
    """One-time parameter preparation (do NOT call per forward).

    Weights are cast to the MXU compute dtype once, so the kernel has no
    per-grid-step weight casts and (for bf16) weight HBM->VMEM bytes and VMEM
    residency are halved.  Biases stay f32: they are added to the f32
    accumulator, preserving accumulation precision.
    """
    w0, b0, w1, b1, w2, b2 = params
    cast_w = lambda w: w.astype(compute_dtype)
    cast_b = lambda b: b.astype(jnp.float32)
    return (cast_w(w0), cast_b(b0), cast_w(w1), cast_b(b1), cast_w(w2), cast_b(b2))


def _choose_tile(batch, max_tile=512):
    """Biggest batch tile up to max_tile, but prefer enough grid steps
    (>= 8 steps of >= 128 rows, else >= 2 steps of >= 64 rows) that per-core
    software pipelining (and v7x megacore sharding) can hide x / out DMAs."""
    b = _round_up(max(batch, 1), _SUBLANE)
    tile = min(max_tile, b)
    for steps, min_rows in ((8, 128), (4, 128), (2, 64)):
        cand = _round_up(_cdiv(b, steps), _SUBLANE)
        if cand >= min_rows:
            return min(tile, cand)
    return tile


def mlp_result_forward(n, x, prepared_params, *, batch_tile=512):
    """Pallas implementation of MLPResult.forward(n, x). `n` is ignored."""
    del n  # MLPResult.forward ignores its first argument

    w0, b0, w1, b1, w2, b2 = prepared_params
    B, input_dim = x.shape
    hidden_dim = w0.shape[1]
    output_dim = w2.shape[1]

    tile = _choose_tile(B, batch_tile)
    grid = (_cdiv(B, tile),)

    # Weights / biases: constant index_map -> fully resident; single-buffer
    # them (no benefit from double-buffering) to halve their VMEM footprint.
    def resident(shape):
        return pl.BlockSpec(shape, lambda i: (0, 0),
                            pipeline_mode=pl.Buffered(1))

    # Explicit VMEM budget from the actual on-chip (lane/sublane padded)
    # working set, so bigger batch tiles / hidden dims are not rejected by the
    # default scoped limit (16 MiB v5e, 32 MiB v6e/v7x).
    w_isz = jnp.dtype(w0.dtype).itemsize
    x_isz = jnp.dtype(x.dtype).itemsize
    in_l, hid_l, out_l = (_round_up(d, _LANE)
                          for d in (input_dim, hidden_dim, output_dim))
    in_s, hid_s = (_round_up(d, _SUBLANE) for d in (input_dim, hidden_dim))
    working_set = (
        2 * tile * in_l * x_isz                                    # x (2 bufs)
        + 2 * tile * out_l * x_isz                                 # out (2 bufs)
        + (in_s * hid_l + hid_s * hid_l + hid_s * out_l) * w_isz   # weights
        + 3 * _SUBLANE * hid_l * 4                                 # biases (f32)
        + 2 * tile * hid_l * 4                                     # f32 hidden h
    )
    vmem_limit = int(min(64 * 2**20, max(32 * 2**20, 2 * working_set)))

    # Cost estimate from TRUE (unpadded) dims and actual storage dtypes.
    cost = pl.CostEstimate(
        flops=2 * B * (input_dim * hidden_dim + hidden_dim * hidden_dim
                       + hidden_dim * output_dim),
        transcendentals=2 * B * hidden_dim,
        bytes_accessed=(
            B * (input_dim + output_dim) * x_isz
            + (input_dim * hidden_dim + hidden_dim * hidden_dim
               + hidden_dim * output_dim) * w_isz
            + (2 * hidden_dim + output_dim) * 4
        ),
    )

    # TODO(synk): on v7x with hidden_dim ~> 1.5-2k (f32 weights nearing the
    # 32-64 MiB scoped VMEM), add a hidden-chunk reduction grid axis with an
    # f32 VMEM accumulator + pl.when init/finalize instead of full residency.
    return pl.pallas_call(
        mlp_kernel,
        out_shape=jax.ShapeDtypeStruct((B, output_dim), x.dtype),
        grid_spec=pltpu.PrefetchScalarGridSpec(
            num_scalar_prefetch=0,
            grid=grid,
            in_specs=[
                # x: tiled along batch; feature dim is the full (unpadded)
                # extent -- Mosaic lane-pads on-chip, no HBM pad copy needed.
                pl.BlockSpec((tile, input_dim), lambda i: (i, 0)),
                resident((input_dim, hidden_dim)),
                resident((1, hidden_dim)),
                resident((hidden_dim, hidden_dim)),
                resident((1, hidden_dim)),
                resident((hidden_dim, output_dim)),
                resident((1, output_dim)),
            ],
            # Output last dim == output_dim (full array): writes only useful
            # bytes; masked stores accepted in this memory-bound regime.
            out_specs=pl.BlockSpec((tile, output_dim), lambda i: (i, 0)),
        ),
        compiler_params=pltpu.CompilerParams(
            dimension_semantics=("parallel",),
            vmem_limit_bytes=vmem_limit,
        ),
        cost_estimate=cost,
    )(x, w0, b0, w1, b1, w2, b2)


def init_params(key, input_dim, hidden_dim, output_dim, dtype=jnp.float32):
    """Deterministic parameter init (shapes match the MLP's nn.Linear layers).

    Weights are stored as [in, out] (i.e. PyTorch W.T) for the x @ W kernel.
    """
    ks = jax.random.split(key, 6)

    def lin(kw, kb, fan_in, fan_out):
        # uniform(-1/sqrt(fan_in), 1/sqrt(fan_in)), like torch.nn.Linear default
        bound = 1.0 / jnp.sqrt(fan_in)
        w = jax.random.uniform(kw, (fan_in, fan_out), dtype, -bound, bound)
        b = jax.random.uniform(kb, (1, fan_out), dtype, -bound, bound)
        return w, b

    w0, b0 = lin(ks[0], ks[1], input_dim, hidden_dim)
    w1, b1 = lin(ks[2], ks[3], hidden_dim, hidden_dim)
    w2, b2 = lin(ks[4], ks[5], hidden_dim, output_dim)
    return (w0, b0, w1, b1, w2, b2)


def mlp_reference(x, params):
    w0, b0, w1, b1, w2, b2 = params
    h = jnp.tanh(x @ w0 + b0)
    h = jnp.tanh(h @ w1 + b1)
    return h @ w2 + b2


if __name__ == "__main__":
    key = jax.random.PRNGKey(0)
    k_x, k_p = jax.random.split(key)

    batch = 256          # -> grid of 2 tiles of 128 rows (both v7x TCs used)
    input_dim = 16
    hidden_dim = 20      # MLP default hidden_dim
    output_dim = 8

    x = jax.random.normal(k_x, (batch, input_dim), jnp.float32)
    n = jnp.int32(3)     # ignored by MLPResult.forward
    params = init_params(k_p, input_dim, hidden_dim, output_dim)
    ref = mlp_reference(x, params)

    # Exactness check with f32 MXU inputs (matches PyTorch f32 semantics).
    out_f32 = mlp_result_forward(n, x, prepare_params(params, jnp.float32))
    out_f32 = jax.block_until_ready(out_f32)
    assert out_f32.shape == (batch, output_dim)
    assert jnp.allclose(out_f32, ref, atol=1e-5, rtol=1e-5)

    # Chip-default compute dtype (bf16 on v6e/v7x -> looser tolerance; f32
    # accumulation is still kept via preferred_element_type).
    cdt = default_compute_dtype()
    out = mlp_result_forward(n, x, prepare_params(params, cdt))
    out = jax.block_until_ready(out)
    tol = 1e-5 if cdt is jnp.float32 else 5e-2
    assert out.shape == (batch, output_dim)
    assert jnp.allclose(out, ref, atol=tol, rtol=tol)

    print("KERNEL_OK")
</pallas_src>

<mosaic_0001>
module attributes {stable_mosaic.version = 11 : i64} {
  func.func @mlp_kernel(%arg0: i32, %arg1: memref<128x16xf32, #tpu.memory_space<vmem>>, %arg2: memref<16x20xf32, #tpu.memory_space<vmem>>, %arg3: memref<1x20xf32, #tpu.memory_space<vmem>>, %arg4: memref<20x20xf32, #tpu.memory_space<vmem>>, %arg5: memref<1x20xf32, #tpu.memory_space<vmem>>, %arg6: memref<20x8xf32, #tpu.memory_space<vmem>>, %arg7: memref<1x8xf32, #tpu.memory_space<vmem>>, %arg8: memref<128x8xf32, #tpu.memory_space<vmem>>) attributes {dimension_semantics = [#tpu.dimension_semantics<parallel>], iteration_bounds = array<i64: 2>, scalar_prefetch = 0 : i64, scratch_operands = 0 : i64, tpu.core_type = #tpu.core_type<tc>, window_params = [{transform_indices = @transform_0, window_bounds = array<i64: 128, 16>}, {pipeline_mode = #tpu.pipeline_mode<synchronous>, transform_indices = @transform_1, window_bounds = array<i64: 16, 20>}, {pipeline_mode = #tpu.pipeline_mode<synchronous>, transform_indices = @transform_2, window_bounds = array<i64: 1, 20>}, {pipeline_mode = #tpu.pipeline_mode<synchronous>, transform_indices = @transform_3, window_bounds = array<i64: 20, 20>}, {pipeline_mode = #tpu.pipeline_mode<synchronous>, transform_indices = @transform_4, window_bounds = array<i64: 1, 20>}, {pipeline_mode = #tpu.pipeline_mode<synchronous>, transform_indices = @transform_5, window_bounds = array<i64: 20, 8>}, {pipeline_mode = #tpu.pipeline_mode<synchronous>, transform_indices = @transform_6, window_bounds = array<i64: 1, 8>}, {transform_indices = @transform_7, window_bounds = array<i64: 128, 8>}]} {
    %c0 = arith.constant 0 : index
    %c0_0 = arith.constant 0 : index
    %0 = vector.load %arg1[%c0, %c0_0] : memref<128x16xf32, #tpu.memory_space<vmem>>, vector<128x16xf32>
    %c0_1 = arith.constant 0 : index
    %c0_2 = arith.constant 0 : index
    %1 = vector.load %arg2[%c0_1, %c0_2] : memref<16x20xf32, #tpu.memory_space<vmem>>, vector<16x20xf32>
    %cst = arith.constant dense<0.000000e+00> : vector<128x20xf32>
    %2 = tpu.matmul %0, %1, %cst {dimension_numbers = #tpu.dot_dimension_numbers<[1], [0], [0], [1], [0, 0, 1, 1], [], []>} : vector<128x16xf32>, vector<16x20xf32>, vector<128x20xf32> -> vector<128x20xf32>
    %c0_3 = arith.constant 0 : index
    %c0_4 = arith.constant 0 : index
    %3 = vector.load %arg3[%c0_3, %c0_4] : memref<1x20xf32, #tpu.memory_space<vmem>>, vector<1x20xf32>
    %4 = vector.broadcast %3 : vector<1x20xf32> to vector<128x20xf32>
    %5 = arith.addf %2, %4 : vector<128x20xf32>
    %6 = math.tanh %5 : vector<128x20xf32>
    %c0_5 = arith.constant 0 : index
    %c0_6 = arith.constant 0 : index
    %7 = vector.load %arg4[%c0_5, %c0_6] : memref<20x20xf32, #tpu.memory_space<vmem>>, vector<20x20xf32>
    %cst_7 = arith.constant dense<0.000000e+00> : vector<128x20xf32>
    %8 = tpu.matmul %6, %7, %cst_7 {dimension_numbers = #tpu.dot_dimension_numbers<[1], [0], [0], [1], [0, 0, 1, 1], [], []>} : vector<128x20xf32>, vector<20x20xf32>, vector<128x20xf32> -> vector<128x20xf32>
    %c0_8 = arith.constant 0 : index
    %c0_9 = arith.constant 0 : index
    %9 = vector.load %arg5[%c0_8, %c0_9] : memref<1x20xf32, #tpu.memory_space<vmem>>, vector<1x20xf32>
    %10 = vector.broadcast %9 : vector<1x20xf32> to vector<128x20xf32>
    %11 = arith.addf %8, %10 : vector<128x20xf32>
    %12 = math.tanh %11 : vector<128x20xf32>
    %c0_10 = arith.constant 0 : index
    %c0_11 = arith.constant 0 : index
    %13 = vector.load %arg6[%c0_10, %c0_11] : memref<20x8xf32, #tpu.memory_space<vmem>>, vector<20x8xf32>
    %cst_12 = arith.constant dense<0.000000e+00> : vector<128x8xf32>
    %14 = tpu.matmul %12, %13, %cst_12 {dimension_numbers = #tpu.dot_dimension_numbers<[1], [0], [0], [1], [0, 0, 1, 1], [], []>} : vector<128x20xf32>, vector<20x8xf32>, vector<128x8xf32> -> vector<128x8xf32>
    %c0_13 = arith.constant 0 : index
    %c0_14 = arith.constant 0 : index
    %15 = vector.load %arg7[%c0_13, %c0_14] : memref<1x8xf32, #tpu.memory_space<vmem>>, vector<1x8xf32>
    %16 = vector.broadcast %15 : vector<1x8xf32> to vector<128x8xf32>
    %17 = arith.addf %14, %16 : vector<128x8xf32>
    %c0_15 = arith.constant 0 : index
    %c0_16 = arith.constant 0 : index
    %18 = vector.load %arg8[%c0_15, %c0_16] : memref<128x8xf32, #tpu.memory_space<vmem>>, vector<128x8xf32>
    tpu.vector_store %arg8[%c0_15, %c0_16], %17 {strides = array<i32>} : memref<128x8xf32, #tpu.memory_space<vmem>>, vector<128x8xf32>,
    return
  }
  func.func @transform_0(%arg0: i32) -> (i32, i32) {
    %c0_i32 = arith.constant 0 : i32
    %c0_i32_0 = arith.constant 0 : i32
    return %arg0, %c0_i32 : i32, i32
  }
  func.func @transform_1(%arg0: i32) -> (i32, i32) {
    %c0_i32 = arith.constant 0 : i32
    %c0_i32_0 = arith.constant 0 : i32
    %c0_i32_1 = arith.constant 0 : i32
    return %c0_i32, %c0_i32_0 : i32, i32
  }
  func.func @transform_2(%arg0: i32) -> (i32, i32) {
    %c0_i32 = arith.constant 0 : i32
    %c0_i32_0 = arith.constant 0 : i32
    %c0_i32_1 = arith.constant 0 : i32
    return %c0_i32, %c0_i32_0 : i32, i32
  }
  func.func @transform_3(%arg0: i32) -> (i32, i32) {
    %c0_i32 = arith.constant 0 : i32
    %c0_i32_0 = arith.constant 0 : i32
    %c0_i32_1 = arith.constant 0 : i32
    return %c0_i32, %c0_i32_0 : i32, i32
  }
  func.func @transform_4(%arg0: i32) -> (i32, i32) {
    %c0_i32 = arith.constant 0 : i32
    %c0_i32_0 = arith.constant 0 : i32
    %c0_i32_1 = arith.constant 0 : i32
    return %c0_i32, %c0_i32_0 : i32, i32
  }
  func.func @transform_5(%arg0: i32) -> (i32, i32) {
    %c0_i32 = arith.constant 0 : i32
    %c0_i32_0 = arith.constant 0 : i32
    %c0_i32_1 = arith.constant 0 : i32
    return %c0_i32, %c0_i32_0 : i32, i32
  }
  func.func @transform_6(%arg0: i32) -> (i32, i32) {
    %c0_i32 = arith.constant 0 : i32
    %c0_i32_0 = arith.constant 0 : i32
    %c0_i32_1 = arith.constant 0 : i32
    return %c0_i32, %c0_i32_0 : i32, i32
  }
  func.func @transform_7(%arg0: i32) -> (i32, i32) {
    %c0_i32 = arith.constant 0 : i32
    %c0_i32_0 = arith.constant 0 : i32
    return %arg0, %c0_i32 : i32, i32
  }
}

</mosaic_0001>

<bundles_post_ra>
// kernel: tpu_custom_call.1
= control target key start
LH: loop header
LB: loop body
LE: loop exit
PB: predicated region body
PF: predicated region fallthrough
CT: control target
= control target key end

     0   :  { %s963_s24 = smov 0   ;;  %s1160_s0 = inlined_call_operand.vmem [shape: f32[256,16], index: 0, kind: input, shape index: {}]   ;;  %s1161_s1 = inlined_call_operand.vmem [shape: f32[16,20], index: 1, kind: input, shape index: {}]   ;;  %s1162_s2 = inlined_call_operand.vmem [shape: f32[1,20], index: 2, kind: input, shape index: {}]   ;;  %s1163_s3 = inlined_call_operand.vmem [shape: f32[20,20], index: 3, kind: input, shape index: {}]   ;;  %s1164_s4 = inlined_call_operand.vmem [shape: f32[1,20], index: 4, kind: input, shape index: {}]   ;;  %s1165_s5 = inlined_call_operand.vmem [shape: f32[20,8], index: 5, kind: input, shape index: {}]   ;;  %s1166_s6 = inlined_call_operand.vmem [shape: f32[1,8], index: 6, kind: input, shape index: {}]   ;;  %s1167_s7 = inlined_call_operand.vmem [shape: f32[256,8], index: 7, kind: output, shape index: {}]  }
   0x1 LB: > { %s771_s25 = sadd.s32 4294967295, %s921_s24   ;;  %p775_p0 = scmp.ge.s32.totalorder %s921_s24, 1  ;;  %s921_s24 = sphi %s963_s24, %s17_s24  }
   0x2   : > { %p238_p1 = scmp.lt.s32.totalorder %s921_s24, 3 }
   0x4   : > { %p239_p2 = pnand %p775_p0, %p238_p1 }
   0x5   : > { %s776_s30 = sshll.u32 (!%p239_p2), %s771_s25, 4 }
   0x6   : > { %242 = sbr.rel (%p239_p2) target bundleno = 546 (0x222), region = 48  ;;  %p271_p3 = scmp.lt.s32.totalorder (!%p239_p2), %s776_s30, 31 }
   0xb   : > { %v299_v0 = vld [vmem:[%s1161_s1 + $0x8] sm:$0xff]  ;;  %v298_v1 = vld [vmem:[%s1161_s1] sm:$0xff]  ;;  %s1169_s30 = smov (!%p271_p3, %s776_s30), 31  ;;  %vm304_vm0 = vcmask 130048   ;;  %v436_v18 = vld [vmem:[%s1163_s3 + $0x10] sm:$0xf] }
   0xc   : > { %367 = vmatpush.msra.mxu0 %v299_v0  ;;  %832 = vmatpush.msra.mxu3 %v299_v0  ;;  %s777_s8 = sshll.u32 %s1169_s30, 3  ;;  %vm490_vm1 = vcmask 1043456   ;;  %v435_v19 = vld [vmem:[%s1163_s3 + $0x8] sm:$0xff]  ;;  %v434_v20 = vld [vmem:[%s1163_s3] sm:$0xff]  ;;  %vm441_vm2 = vcmask 162816   ;;  %vm698_vm3 = vcmask 64512  }
   0xd   : > { %s985_s11 = scalar_lea.vmem %s1160_s0, %s777_s8  ;;  %796 = vmatpush.msk.msra.mxu1 %vm490_vm1, %v436_v18  ;;  %v1033_v21 = vld [vmem:[%s1162_s2] ss:$0 sm:$0xff]  ;;  %v577_v0 = vld [vmem:[%s1165_s5 + $0x10] sm:$0xf]  ;;  %s1123_s12 = scalar_lea.vmem %s1167_s7, %s777_s8 }
   0xe   : > { %368 = vmatpush.msra.mxu0 %v298_v1  ;;  %833 = vmatpush.msra.mxu3 %v298_v1  ;;  %v282_v2 = vld [vmem:[%s985_s11] sm:$0xff]  ;;  %v283_v3 = vld [vmem:[%s985_s11 + $0x8] sm:$0xff]  ;;  %v284_v4 = vld [vmem:[%s985_s11 + $0x10] sm:$0xff] }
   0xf   : > { %780 = vmatmul.msk.f32.vlgmr.msra.gmra.mxu0 %vm304_vm0, %v282_v2  ;;  %v285_v5 = vld [vmem:[%s985_s11 + $0x18] sm:$0xff]  ;;  %v286_v6 = vld [vmem:[%s985_s11 + $0x20] sm:$0xff]  ;;  %v287_v7 = vld [vmem:[%s985_s11 + $0x28] sm:$0xff]  ;;  %508 = vmatpush.msra.mxu1 %v435_v19 }
  0x10   : > { %v288_v8 = vld [vmem:[%s985_s11 + $0x30] sm:$0xff]  ;;  %v289_v9 = vld [vmem:[%s985_s11 + $0x38] sm:$0xff]  ;;  %v290_v10 = vld [vmem:[%s985_s11 + $0x40] sm:$0xff]  ;;  %834 = vmatpush.msk.msrb.mxu3 %vm490_vm1, %v436_v18  ;;  %813 = vmatpush.msk.msra.mxu2 %vm490_vm1, %v577_v0 }
  0x11   : > { %v295_v11 = vld [vmem:[%s985_s11 + $0x68] sm:$0xff]  ;;  %v296_v13 = vld [vmem:[%s985_s11 + $0x70] sm:$0xff]  ;;  %v297_v15 = vld [vmem:[%s985_s11 + $0x78] sm:$0xff]  ;;  %509 = vmatpush.msra.mxu1 %v434_v20 }
  0x12   : > { %793 = vmatmul.msk.f32.vlgmr.msra.gmra.mxu3 %vm304_vm0, %v295_v11  ;;  %v291_v12 = vld [vmem:[%s985_s11 + $0x48] sm:$0xff]  ;;  %v292_v14 = vld [vmem:[%s985_s11 + $0x50] sm:$0xff]  ;;  %v293_v16 = vld [vmem:[%s985_s11 + $0x58] sm:$0xff] }
  0x13   : > { %v294_v17 = vld [vmem:[%s985_s11 + $0x60] sm:$0xff]  ;;  %835 = vmatpush.msrb.mxu3 %v435_v19  ;;  %v576_v1 = vld [vmem:[%s1165_s5 + $0x8] sm:$0xff] }
  0x14   : > { %647 = vmatpush.msra.mxu2 %v576_v1 }
  0x15   : > { %836 = vmatpush.msrb.mxu3 %v434_v20 }
  0x17   : > { %781 = vmatmul.msk.f32.gmra.mxu0 %vm304_vm0, %v283_v3  ;;  %837 = vmatpush.msk.msra.mxu3 %vm490_vm1, %v577_v0 }
  0x19   : > { %838 = vmatpush.msra.mxu3 %v576_v1 }
  0x1a   : > { %794 = vmatmul.msk.f32.gmra.mxu3 %vm304_vm0, %v296_v13 }
  0x1f   : > { %782 = vmatmul.msk.f32.gmra.mxu0 %vm304_vm0, %v284_v4  ;;  %v575_v4 = vld [vmem:[%s1165_s5] sm:$0xff] }
  0x20   : > { %648 = vmatpush.msra.mxu2 %v575_v4  ;;  %839 = vmatpush.msra.mxu3 %v575_v4 }
  0x22   : > { %795 = vmatmul.msk.f32.gmra.mxu3 %vm304_vm0, %v297_v15 }
  0x27   : > { %783 = vmatmul.msk.f32.gmra.mxu0 %vm304_vm0, %v285_v5 }
  0x2f   : > { %784 = vmatmul.msk.f32.gmra.mxu0 %vm304_vm0, %v286_v6 }
  0x37   : > { %785 = vmatmul.msk.f32.gmra.mxu0 %vm304_vm0, %v287_v7 }
  0x3f   : > { %786 = vmatmul.msk.f32.gmra.mxu0 %vm304_vm0, %v288_v8 }
  0x47   : > { %787 = vmatmul.msk.f32.gmra.mxu0 %vm304_vm0, %v289_v9  ;;  %v1081_v9 = vld [vmem:[%s1164_s4] ss:$0 sm:$0xff] }
  0x4f   : > { %788 = vmatmul.msk.f32.gmra.mxu0 %vm304_vm0, %v290_v10 }
  0x57   : > { %789 = vmatmul.msk.f32.gmra.mxu0 %vm304_vm0, %v291_v12 }
  0x5f   : > { %790 = vmatmul.msk.f32.gmra.mxu0 %vm304_vm0, %v292_v14 }
  0x67   : > { %791 = vmatmul.msk.f32.gmra.mxu0 %vm304_vm0, %v293_v16 }
  0x6f   : > { %792 = vmatmul.msk.f32.gmra.mxu0 %vm304_vm0, %v294_v17 }
  0x8c   : > { %v370_v22 = vpop.f32.mrf.mxu0 }
  0x8d   : > { %v371_v23 = vadd.f32 %v1033_v21, %v370_v22 }
  0x8f   : > { %851 = vtanh.f32 %v371_v23 }
  0x94   : > { %v373_v24 = vpop.f32.mrf.mxu0 }
  0x95   : > { %v852_v25 = vpop.eup %851  ;;  %v374_v26 = vadd.f32 %v1033_v21, %v373_v24  ;;  %v409_v57 = vpop.f32.mrf.mxu3 }
  0x96   : > { %797 = vmatmul.msk.f32.vlgmr.msra.gmra.mxu1 %vm441_vm2, %v852_v25  ;;  %v410_v61 = vadd.f32 %v1033_v21, %v409_v57 }
  0x97   : > { %853 = vtanh.f32 %v374_v26 }
  0x9c   : > { %v376_v27 = vpop.f32.mrf.mxu0 }
  0x9d   : > { %v854_v28 = vpop.eup %853  ;;  %v377_v29 = vadd.f32 %v1033_v21, %v376_v27  ;;  %v412_v62 = vpop.f32.mrf.mxu3 }
  0x9e   : > { %798 = vmatmul.msk.f32.gmra.mxu1 %vm441_vm2, %v854_v28  ;;  %v413_v2 = vadd.f32 %v1033_v21, %v412_v62 }
  0x9f   : > { %855 = vtanh.f32 %v377_v29 }
  0xa4   : > { %v379_v30 = vpop.f32.mrf.mxu0 }
  0xa5   : > { %v856_v31 = vpop.eup %855  ;;  %v380_v32 = vadd.f32 %v1033_v21, %v379_v30  ;;  %v415_v5 = vpop.f32.mrf.mxu3 }
  0xa6   : > { %799 = vmatmul.msk.f32.gmra.mxu1 %vm441_vm2, %v856_v31  ;;  %v416_v6 = vadd.f32 %v1033_v21, %v415_v5 }
  0xa7   : > { %857 = vtanh.f32 %v380_v32 }
  0xac   : > { %v382_v33 = vpop.f32.mrf.mxu0 }
  0xad   : > { %v858_v34 = vpop.eup %857  ;;  %v383_v35 = vadd.f32 %v1033_v21, %v382_v33 }
  0xae   : > { %800 = vmatmul.msk.f32.gmra.mxu1 %vm441_vm2, %v858_v34 }
  0xaf   : > { %859 = vtanh.f32 %v383_v35 }
  0xb4   : > { %v385_v36 = vpop.f32.mrf.mxu0 }
  0xb5   : > { %v860_v37 = vpop.eup %859  ;;  %v386_v38 = vadd.f32 %v1033_v21, %v385_v36 }
  0xb6   : > { %801 = vmatmul.msk.f32.gmra.mxu1 %vm441_vm2, %v860_v37 }
  0xb7   : > { %861 = vtanh.f32 %v386_v38 }
  0xbc   : > { %v388_v39 = vpop.f32.mrf.mxu0 }
  0xbd   : > { %v862_v40 = vpop.eup %861  ;;  %v389_v41 = vadd.f32 %v1033_v21, %v388_v39 }
  0xbe   : > { %802 = vmatmul.msk.f32.gmra.mxu1 %vm441_vm2, %v862_v40 }
  0xbf   : > { %863 = vtanh.f32 %v389_v41 }
  0xc4   : > { %v391_v42 = vpop.f32.mrf.mxu0 }
  0xc5   : > { %v864_v43 = vpop.eup %863  ;;  %v392_v44 = vadd.f32 %v1033_v21, %v391_v42 }
  0xc6   : > { %803 = vmatmul.msk.f32.gmra.mxu1 %vm441_vm2, %v864_v43 }
  0xc7   : > { %865 = vtanh.f32 %v392_v44 }
  0xcc   : > { %v394_v45 = vpop.f32.mrf.mxu0 }
  0xcd   : > { %v866_v46 = vpop.eup %865  ;;  %v395_v47 = vadd.f32 %v1033_v21, %v394_v45 }
  0xce   : > { %804 = vmatmul.msk.f32.gmra.mxu1 %vm441_vm2, %v866_v46 }
  0xcf   : > { %867 = vtanh.f32 %v395_v47 }
  0xd4   : > { %v397_v48 = vpop.f32.mrf.mxu0 }
  0xd5   : > { %v868_v49 = vpop.eup %867  ;;  %v398_v50 = vadd.f32 %v1033_v21, %v397_v48 }
  0xd6   : > { %805 = vmatmul.msk.f32.gmra.mxu1 %vm441_vm2, %v868_v49 }
  0xd7   : > { %869 = vtanh.f32 %v398_v50 }
  0xdc   : > { %v400_v51 = vpop.f32.mrf.mxu0 }
  0xdd   : > { %v870_v52 = vpop.eup %869  ;;  %v401_v53 = vadd.f32 %v1033_v21, %v400_v51 }
  0xde   : > { %806 = vmatmul.msk.f32.gmra.mxu1 %vm441_vm2, %v870_v52 }
  0xdf   : > { %871 = vtanh.f32 %v401_v53 }
  0xe4   : > { %v403_v54 = vpop.f32.mrf.mxu0 }
  0xe5   : > { %v872_v55 = vpop.eup %871  ;;  %v404_v56 = vadd.f32 %v1033_v21, %v403_v54 }
  0xe6   : > { %807 = vmatmul.msk.f32.gmra.mxu1 %vm441_vm2, %v872_v55 }
  0xe7   : > { %873 = vtanh.f32 %v404_v56 }
  0xec   : > { %v406_v58 = vpop.f32.mrf.mxu0 }
  0xed   : > { %v874_v59 = vpop.eup %873  ;;  %v407_v60 = vadd.f32 %v1033_v21, %v406_v58  ;;  %v850_v58 = vld [vmem:[%s1166_s6] ss:$0 sm:$0xff] }
  0xee   : > { %808 = vmatmul.msk.f32.gmra.mxu1 %vm441_vm2, %v874_v59 }
  0xef   : > { %875 = vtanh.f32 %v407_v60 }
  0xf0   : > { %877 = vtanh.f32 %v410_v61 }
  0xf1   : > { %879 = vtanh.f32 %v413_v2 }
  0xf2   : > { %881 = vtanh.f32 %v416_v6 }
  0xf5   : > { %v876_v63 = vpop.eup %875 }
  0xf6   : > { %809 = vmatmul.msk.f32.vlgmr.msrb.gmra.mxu3 %vm441_vm2, %v876_v63  ;;  %v878_v3 = vpop.eup %877 }
  0xf7   : > { %v880_v7 = vpop.eup %879 }
  0xf8   : > { %v882_v8 = vpop.eup %881 }
  0xfe   : > { %810 = vmatmul.msk.f32.gmra.mxu3 %vm441_vm2, %v878_v3 }
 0x106   : > { %811 = vmatmul.msk.f32.gmra.mxu3 %vm441_vm2, %v880_v7 }
 0x10e   : > { %812 = vmatmul.msk.f32.gmra.mxu3 %vm441_vm2, %v882_v8 }
 0x113   : > { %v511_v10 = vpop.f32.mrf.mxu1 }
 0x114   : > { %v512_v11 = vadd.f32 %v1081_v9, %v511_v10 }
 0x116   : > { %883 = vtanh.f32 %v512_v11 }
 0x11b   : > { %v514_v12 = vpop.f32.mrf.mxu1 }
 0x11c   : > { %v884_v13 = vpop.eup %883  ;;  %v515_v14 = vadd.f32 %v1081_v9, %v514_v12 }
 0x11d   : > { %814 = vmatmul.msk.f32.vlgmr.msra.gmra.mxu2 %vm441_vm2, %v884_v13 }
 0x11e   : > { %885 = vtanh.f32 %v515_v14 }
 0x123   : > { %v517_v15 = vpop.f32.mrf.mxu1 }
 0x124   : > { %v886_v16 = vpop.eup %885  ;;  %v518_v17 = vadd.f32 %v1081_v9, %v517_v15 }
 0x125   : > { %815 = vmatmul.msk.f32.gmra.mxu2 %vm441_vm2, %v886_v16 }
 0x126   : > { %887 = vtanh.f32 %v518_v17 }
 0x12b   : > { %v520_v18 = vpop.f32.mrf.mxu1 }
 0x12c   : > { %v888_v19 = vpop.eup %887  ;;  %v521_v20 = vadd.f32 %v1081_v9, %v520_v18 }
 0x12d   : > { %816 = vmatmul.msk.f32.gmra.mxu2 %vm441_vm2, %v888_v19 }
 0x12e   : > { %889 = vtanh.f32 %v521_v20 }
 0x133   : > { %v523_v21 = vpop.f32.mrf.mxu1 }
 0x134   : > { %v890_v22 = vpop.eup %889  ;;  %v524_v23 = vadd.f32 %v1081_v9, %v523_v21 }
 0x135   : > { %817 = vmatmul.msk.f32.gmra.mxu2 %vm441_vm2, %v890_v22 }
 0x136   : > { %891 = vtanh.f32 %v524_v23 }
 0x13b   : > { %v526_v24 = vpop.f32.mrf.mxu1 }
 0x13c   : > { %v892_v25 = vpop.eup %891  ;;  %v527_v26 = vadd.f32 %v1081_v9, %v526_v24 }
 0x13d   : > { %818 = vmatmul.msk.f32.gmra.mxu2 %vm441_vm2, %v892_v25 }
 0x13e   : > { %893 = vtanh.f32 %v527_v26 }
 0x143   : > { %v529_v27 = vpop.f32.mrf.mxu1 }
 0x144   : > { %v894_v28 = vpop.eup %893  ;;  %v530_v29 = vadd.f32 %v1081_v9, %v529_v27 }
 0x145   : > { %819 = vmatmul.msk.f32.gmra.mxu2 %vm441_vm2, %v894_v28 }
 0x146   : > { %895 = vtanh.f32 %v530_v29 }
 0x14b   : > { %v532_v30 = vpop.f32.mrf.mxu1 }
 0x14c   : > { %v896_v31 = vpop.eup %895  ;;  %v533_v32 = vadd.f32 %v1081_v9, %v532_v30 }
 0x14d   : > { %820 = vmatmul.msk.f32.gmra.mxu2 %vm441_vm2, %v896_v31 }
 0x14e   : > { %897 = vtanh.f32 %v533_v32 }
 0x153   : > { %v535_v33 = vpop.f32.mrf.mxu1 }
 0x154   : > { %v898_v34 = vpop.eup %897  ;;  %v536_v35 = vadd.f32 %v1081_v9, %v535_v33 }
 0x155   : > { %821 = vmatmul.msk.f32.gmra.mxu2 %vm441_vm2, %v898_v34 }
 0x156   : > { %899 = vtanh.f32 %v536_v35 }
 0x15b   : > { %v538_v36 = vpop.f32.mrf.mxu1 }
 0x15c   : > { %v900_v37 = vpop.eup %899  ;;  %v539_v38 = vadd.f32 %v1081_v9, %v538_v36 }
 0x15d   : > { %822 = vmatmul.msk.f32.gmra.mxu2 %vm441_vm2, %v900_v37 }
 0x15e   : > { %901 = vtanh.f32 %v539_v38 }
 0x163   : > { %v541_v39 = vpop.f32.mrf.mxu1 }
 0x164   : > { %v902_v40 = vpop.eup %901  ;;  %v542_v41 = vadd.f32 %v1081_v9, %v541_v39 }
 0x165   : > { %823 = vmatmul.msk.f32.gmra.mxu2 %vm441_vm2, %v902_v40 }
 0x166   : > { %903 = vtanh.f32 %v542_v41 }
 0x16b   : > { %v544_v42 = vpop.f32.mrf.mxu1 }
 0x16c   : > { %v904_v43 = vpop.eup %903  ;;  %v545_v44 = vadd.f32 %v1081_v9, %v544_v42 }
 0x16d   : > { %824 = vmatmul.msk.f32.gmra.mxu2 %vm441_vm2, %v904_v43 }
 0x16e   : > { %905 = vtanh.f32 %v545_v44 }
 0x174   : > { %v906_v45 = vpop.eup %905 }
 0x175   : > { %825 = vmatmul.msk.f32.gmra.mxu2 %vm441_vm2, %v906_v45 }
 0x179   : > { %v547_v46 = vpop.f32.mrf.mxu3 }
 0x17a   : > { %v548_v47 = vadd.f32 %v1081_v9, %v547_v46 }
 0x17c   : > { %907 = vtanh.f32 %v548_v47 }
 0x181   : > { %v550_v48 = vpop.f32.mrf.mxu3 }
 0x182   : > { %v908_v49 = vpop.eup %907  ;;  %v551_v50 = vadd.f32 %v1081_v9, %v550_v48 }
 0x183   : > { %826 = vmatmul.msk.f32.vlgmr.msra.gmra.mxu3 %vm441_vm2, %v908_v49 }
 0x184   : > { %909 = vtanh.f32 %v551_v50 }
 0x189   : > { %v553_v51 = vpop.f32.mrf.mxu3 }
 0x18a   : > { %v910_v52 = vpop.eup %909  ;;  %v554_v53 = vadd.f32 %v1081_v9, %v553_v51 }
 0x18b   : > { %827 = vmatmul.msk.f32.gmra.mxu3 %vm441_vm2, %v910_v52 }
 0x18c   : > { %911 = vtanh.f32 %v554_v53 }
 0x191   : > { %v556_v54 = vpop.f32.mrf.mxu3 }
 0x192   : > { %v912_v55 = vpop.eup %911  ;;  %v557_v56 = vadd.f32 %v1081_v9, %v556_v54 }
 0x193   : > { %828 = vmatmul.msk.f32.gmra.mxu3 %vm441_vm2, %v912_v55 }
 0x194   : > { %913 = vtanh.f32 %v557_v56 }
 0x19a   : > { %v914_v57 = vpop.eup %913 }
 0x19b   : > { %829 = vmatmul.msk.f32.gmra.mxu3 %vm441_vm2, %v914_v57 }
 0x1a0   : > { %v650_v59 = vpop.f32.mrf.mxu2 }
 0x1a1   : > { %v651_v60 = vadd.f32 %v850_v58, %v650_v59 }
 0x1a3   : > { %699 = vst.msk [vmem:[%s1123_s12] sm:$0xff] %vm698_vm3, %v651_v60 }
 0x1a8   : > { %v653_v61 = vpop.f32.mrf.mxu2 }
 0x1a9   : > { %v654_v62 = vadd.f32 %v850_v58, %v653_v61 }
 0x1ab   : > { %700 = vst.msk [vmem:[%s1123_s12 + $0x8] sm:$0xff] %vm698_vm3, %v654_v62 }
 0x1b0   : > { %v656_v63 = vpop.f32.mrf.mxu2 }
 0x1b1   : > { %v657_v0 = vadd.f32 %v850_v58, %v656_v63 }
 0x1b3   : > { %701 = vst.msk [vmem:[%s1123_s12 + $0x10] sm:$0xff] %vm698_vm3, %v657_v0 }
 0x1b8   : > { %v659_v1 = vpop.f32.mrf.mxu2 }
 0x1b9   : > { %v660_v2 = vadd.f32 %v850_v58, %v659_v1 }
 0x1bb   : > { %702 = vst.msk [vmem:[%s1123_s12 + $0x18] sm:$0xff] %vm698_vm3, %v660_v2 }
 0x1c0   : > { %v662_v3 = vpop.f32.mrf.mxu2 }
 0x1c1   : > { %v663_v4 = vadd.f32 %v850_v58, %v662_v3 }
 0x1c3   : > { %703 = vst.msk [vmem:[%s1123_s12 + $0x20] sm:$0xff] %vm698_vm3, %v663_v4 }
 0x1c8   : > { %v665_v5 = vpop.f32.mrf.mxu2 }
 0x1c9   : > { %v666_v6 = vadd.f32 %v850_v58, %v665_v5 }
 0x1cb   : > { %704 = vst.msk [vmem:[%s1123_s12 + $0x28] sm:$0xff] %vm698_vm3, %v666_v6 }
 0x1d0   : > { %v668_v7 = vpop.f32.mrf.mxu2 }
 0x1d1   : > { %v669_v8 = vadd.f32 %v850_v58, %v668_v7 }
 0x1d3   : > { %705 = vst.msk [vmem:[%s1123_s12 + $0x30] sm:$0xff] %vm698_vm3, %v669_v8 }
 0x1d8   : > { %v671_v9 = vpop.f32.mrf.mxu2 }
 0x1d9   : > { %v672_v10 = vadd.f32 %v850_v58, %v671_v9 }
 0x1db   : > { %706 = vst.msk [vmem:[%s1123_s12 + $0x38] sm:$0xff] %vm698_vm3, %v672_v10 }
 0x1e0   : > { %v674_v11 = vpop.f32.mrf.mxu2 }
 0x1e1   : > { %v675_v12 = vadd.f32 %v850_v58, %v674_v11 }
 0x1e3   : > { %707 = vst.msk [vmem:[%s1123_s12 + $0x40] sm:$0xff] %vm698_vm3, %v675_v12 }
 0x1e8   : > { %v677_v13 = vpop.f32.mrf.mxu2 }
 0x1e9   : > { %v678_v14 = vadd.f32 %v850_v58, %v677_v13 }
 0x1eb   : > { %708 = vst.msk [vmem:[%s1123_s12 + $0x48] sm:$0xff] %vm698_vm3, %v678_v14 }
 0x1f0   : > { %v680_v15 = vpop.f32.mrf.mxu2 }
 0x1f1   : > { %v681_v16 = vadd.f32 %v850_v58, %v680_v15 }
 0x1f3   : > { %709 = vst.msk [vmem:[%s1123_s12 + $0x50] sm:$0xff] %vm698_vm3, %v681_v16 }
 0x1f8   : > { %v683_v17 = vpop.f32.mrf.mxu2 }
 0x1f9   : > { %v684_v18 = vadd.f32 %v850_v58, %v683_v17 }
 0x1fb   : > { %710 = vst.msk [vmem:[%s1123_s12 + $0x58] sm:$0xff] %vm698_vm3, %v684_v18 }
 0x206   : > { %v686_v19 = vpop.f32.mrf.mxu3 }
 0x207   : > { %v687_v20 = vadd.f32 %v850_v58, %v686_v19 }
 0x209   : > { %711 = vst.msk [vmem:[%s1123_s12 + $0x60] sm:$0xff] %vm698_vm3, %v687_v20 }
 0x20e   : > { %v689_v21 = vpop.f32.mrf.mxu3 }
 0x20f   : > { %v690_v22 = vadd.f32 %v850_v58, %v689_v21 }
 0x211   : > { %712 = vst.msk [vmem:[%s1123_s12 + $0x68] sm:$0xff] %vm698_vm3, %v690_v22 }
 0x216   : > { %v692_v23 = vpop.f32.mrf.mxu3 }
 0x217   : > { %v693_v24 = vadd.f32 %v850_v58, %v692_v23 }
 0x219   : > { %713 = vst.msk [vmem:[%s1123_s12 + $0x70] sm:$0xff] %vm698_vm3, %v693_v24 }
 0x21e   : > { %v695_v25 = vpop.f32.mrf.mxu3 }
 0x21f   : > { %v696_v26 = vadd.f32 %v850_v58, %v695_v25 }
 0x221   : > { %714 = vst.msk [vmem:[%s1123_s12 + $0x78] sm:$0xff] %vm698_vm3, %v696_v26 }
 0x222 PF: > { %s17_s24 = sadd.s32 1, %s921_s24  }
 0x223   : > { %p14_p4 = scmp.ge.s32.totalorder %s17_s24, 4  }
 0x225   :  { %16 = sbr.rel (!%p14_p4) target bundleno = 1 (0x1), region = 78 }

</bundles_post_ra>
